<compile_context>
chip_gen: v5e
topology: v5e:2x2
jax: 0.10.0
libtpu: 0.0.40
codegen_flags: <defaults>
</compile_context>

<pallas_src>
import functools

import jax
import jax.numpy as jnp
import numpy as np
from jax.experimental import pallas as pl
from jax.experimental.pallas import tpu as pltpu

NEG_FILL = -9.0e15      # -9000000000000000.0 from the PyTorch source
PAD_NEG = -1.0e30       # padded (fake) neighbor columns -> exp underflows to exactly 0


def _round_up(x, m):
    return ((x + m - 1) // m) * m


def _largest_tile(n, candidates):
    for c in candidates:
        if n % c == 0:
            return c
    return candidates[-1]


# --------------------------------------------------------------------------------------
# Kernel 1: projection.  Wh on the MXU with bf16 operands / f32 accumulation; per-node
# scores with f32 operands so the softmax arguments stay exact.  Both outputs are
# lane-dense (wh_pad and 128 wide) -> unmasked stores.
# --------------------------------------------------------------------------------------
def _proj_kernel(h_ref, w_ref, ws_ref, wh_ref, s_ref):
    h = h_ref[...]
    wh = jnp.dot(h.astype(jnp.bfloat16), w_ref[...], preferred_element_type=jnp.float32)
    wh_ref[...] = wh.astype(jnp.bfloat16)                    # lane-dense bf16 Wh
    s_ref[...] = jnp.dot(h, ws_ref[...], preferred_element_type=jnp.float32)


# --------------------------------------------------------------------------------------
# Kernel 2: flash-style online-softmax attention + aggregation.
# grid = (i_tiles, j_tiles); neighbor (j) axis last / "arbitrary" (reduction), i axis
# "parallel" (megacore on v7x).  Wh is either fully VMEM-resident (sliced with pl.ds)
# or streamed one (tn, wh_pad) tile per step.
# --------------------------------------------------------------------------------------
def _attn_kernel(fill_ref, si_ref, sj_ref, adj_ref, wh_ref, out_ref,
                 m_ref, l_ref, acc_ref, *, tn, wh_resident):
    j = pl.program_id(1)

    @pl.when(j == 0)
    def _init():
        m_ref[...] = jnp.full(m_ref.shape, -jnp.inf, dtype=m_ref.dtype)
        l_ref[...] = jnp.zeros(l_ref.shape, dtype=l_ref.dtype)
        acc_ref[...] = jnp.zeros(acc_ref.shape, dtype=acc_ref.dtype)

    # score[i,j] = a1.Wh[i] + a2.Wh[j]   ((TM,1)+(1,TN) broadcast add, no transposes)
    score = si_ref[...] + sj_ref[...]
    # leaky_relu(0.2) as a single VPU max; non-edges get leaky(fill), precomputed on host.
    e = jnp.maximum(score, 0.2 * score)
    e = jnp.where(adj_ref[...] != 0, e, fill_ref[0])

    # Online (flash-style) softmax over the neighbor axis (f32 throughout).
    m_prev = m_ref[...]
    m_new = jnp.maximum(m_prev, jnp.max(e, axis=1, keepdims=True))
    corr = jnp.exp(m_prev - m_new)
    p = jnp.exp(e - m_new)
    l_ref[...] = corr * l_ref[...] + jnp.sum(p, axis=1, keepdims=True)

    if wh_resident:
        wh_blk = wh_ref[pl.ds(pl.multiple_of(j * tn, tn), tn), :]
    else:
        wh_blk = wh_ref[...]
    acc_ref[...] = corr * acc_ref[...] + jnp.dot(
        p.astype(jnp.bfloat16), wh_blk, preferred_element_type=jnp.float32)
    m_ref[...] = m_new

    @pl.when(j == pl.num_programs(1) - 1)
    def _finalize():
        # Exact reciprocal: once per i-tile, negligible cost, best accuracy.
        out_ref[...] = (acc_ref[...] / l_ref[...]).astype(out_ref.dtype)


def gat_forward(h, fc_weight, attn_weight, adj):
    """h: (N, in_dim); fc_weight: (out_dim, in_dim) [torch layout];
    attn_weight: (1, 2*out_dim) [torch layout]; adj: (N, N) mask (nonzero == edge i->j)."""
    N, in_dim = h.shape
    out_dim = fc_weight.shape[0]

    # ---- parameter preprocessing (tiny, one-time, plain XLA plumbing) ----------------
    wh_pad = _round_up(max(out_dim, 1), 128)                 # Wh / acc / output lane width
    w = fc_weight.T.astype(jnp.float32)                      # (in_dim, out_dim)
    a1 = attn_weight[:, :out_dim].astype(jnp.float32)        # (1, out_dim)
    a2 = attn_weight[:, out_dim:].astype(jnp.float32)        # (1, out_dim)

    w_bf = jnp.zeros((in_dim, wh_pad), jnp.float32).at[:, :out_dim].set(w)
    w_bf = w_bf.astype(jnp.bfloat16)                         # bf16 operand for Wh matmul

    w_s = jnp.zeros((in_dim, 128), jnp.float32)              # f32 operand for exact scores
    w_s = w_s.at[:, 0].set((w @ a1.T)[:, 0])                 # col 0 -> s_i = a1 . Wh
    w_s = w_s.at[:, 1].set((w @ a2.T)[:, 0])                 # col 1 -> s_j = a2 . Wh

    # Non-edge score produced by attn_fc on a -9e15-filled row, with leaky_relu(0.2)
    # already applied (per-call constant); lives in SMEM inside kernel 2.
    fill = (NEG_FILL * jnp.sum(attn_weight)).astype(jnp.float32)
    fill_e = jnp.where(fill >= 0.0, fill, 0.2 * fill).reshape(1)

    # ---- pad the node axis to a tile multiple ----------------------------------------
    npad = _round_up(N, 128)
    h_pad = jnp.zeros((npad, in_dim), jnp.float32).at[:N, :].set(h.astype(jnp.float32))
    adj_i8 = jnp.zeros((npad, npad), jnp.int8).at[:N, :N].set((adj != 0).astype(jnp.int8))
    adj_i8 = adj_i8.at[:, N:].set(jnp.int8(1))   # fake edges; killed via s_j = -1e30

    # ---- kernel 1: projection Wh (bf16) + per-node scores (f32, lane-dense slab) -----
    tm1 = 256 if npad % 256 == 0 else 128
    wh, s_pair = pl.pallas_call(
        _proj_kernel,
        out_shape=(jax.ShapeDtypeStruct((npad, wh_pad), jnp.bfloat16),
                   jax.ShapeDtypeStruct((npad, 128), jnp.float32)),
        grid_spec=pltpu.PrefetchScalarGridSpec(
            num_scalar_prefetch=0,
            grid=(npad // tm1,),
            in_specs=[pl.BlockSpec((tm1, in_dim), lambda i: (i, 0)),
                      pl.BlockSpec((in_dim, wh_pad), lambda i: (0, 0)),
                      pl.BlockSpec((in_dim, 128), lambda i: (0, 0))],
            out_specs=[pl.BlockSpec((tm1, wh_pad), lambda i: (i, 0)),
                       pl.BlockSpec((tm1, 128), lambda i: (i, 0))]),
        compiler_params=pltpu.CompilerParams(dimension_semantics=("parallel",)),
    )(h_pad, w_bf, w_s)

    s_i = s_pair[:, 0:1]                                     # (npad, 1) column for i-tiles
    s_j = s_pair[:, 1].reshape(1, npad)                      # (1, npad) row for j-tiles
    if npad > N:
        s_j = s_j.at[:, N:].set(jnp.float32(PAD_NEG))        # exclude padded neighbors

    # ---- kernel 2: tiled online-softmax attention + aggregation ----------------------
    # Keep the "parallel" i axis at >= 2 iterations (v7x megacore) unless N is tiny.
    tm = 256 if (npad % 256 == 0 and npad >= 512) else 128
    tn = _largest_tile(npad, (512, 256, 128))                # bigger neighbor tiles
    n_i, n_j = npad // tm, npad // tn

    # Resident Wh: DMA'd once and reused by every (i, j) step when its double-buffered
    # bf16 footprint is <= 4 MiB (well within every generation's scoped-VMEM default
    # once tiles + scratch are added); otherwise stream one (tn, wh_pad) tile per step.
    wh_resident = 2 * npad * wh_pad * 2 <= (4 << 20)
    wh_spec = (pl.BlockSpec((npad, wh_pad), lambda i, j: (0, 0)) if wh_resident
               else pl.BlockSpec((tn, wh_pad), lambda i, j: (j, 0)))

    out_pad = pl.pallas_call(
        functools.partial(_attn_kernel, tn=tn, wh_resident=wh_resident),
        out_shape=jax.ShapeDtypeStruct((npad, wh_pad), jnp.float32),
        grid_spec=pltpu.PrefetchScalarGridSpec(
            num_scalar_prefetch=0,
            grid=(n_i, n_j),                                 # neighbor axis last (reduction)
            in_specs=[pl.BlockSpec(memory_space=pltpu.MemorySpace.SMEM),  # fill scalar
                      pl.BlockSpec((tm, 1), lambda i, j: (i, 0)),         # s_i column
                      pl.BlockSpec((1, tn), lambda i, j: (0, j)),         # s_j row
                      pl.BlockSpec((tm, tn), lambda i, j: (i, j)),        # adj tile (int8)
                      wh_spec],                                           # Wh (bf16)
            out_specs=pl.BlockSpec((tm, wh_pad), lambda i, j: (i, 0)),
            scratch_shapes=[pltpu.VMEM((tm, 1), jnp.float32),             # running max
                            pltpu.VMEM((tm, 1), jnp.float32),             # running sum
                            pltpu.VMEM((tm, wh_pad), jnp.float32)]),      # running acc
        compiler_params=pltpu.CompilerParams(
            dimension_semantics=("parallel", "arbitrary")),
    )(fill_e, s_i, s_j, adj_i8, wh)

    return out_pad[:N, :out_dim]


def gat_reference(h, fc_weight, attn_weight, adj):
    """Pure-JAX replica of the PyTorch forward (eval mode) for validation."""
    wh = h @ fc_weight.T                                     # (N, out_dim)
    N, out_dim = wh.shape
    cat = jnp.concatenate(
        [jnp.broadcast_to(wh[:, None, :], (N, N, out_dim)),
         jnp.broadcast_to(wh[None, :, :], (N, N, out_dim))], axis=-1)
    w_ij = jnp.where(adj[:, :, None] > 0.0, cat, NEG_FILL)   # (N, N, 2*out_dim)
    score = w_ij @ attn_weight.T                             # (N, N, 1)
    e = jnp.where(score >= 0.0, score, 0.2 * score)
    alpha = jax.nn.softmax(e, axis=1)                        # (N, N, 1)
    return jnp.sum(alpha * wh, axis=1)                       # (N, out_dim)


if __name__ == "__main__":
    N, in_dim, out_dim = 256, 64, 32

    key = jax.random.PRNGKey(0)
    k_h, k_fc, k_attn = jax.random.split(key, 3)

    # Deterministic Xavier-normal init with relu gain (matches reset_parameters shapes).
    gain = float(np.sqrt(2.0))
    std_fc = gain * np.sqrt(2.0 / (in_dim + out_dim))
    std_attn = gain * np.sqrt(2.0 / (1 + 2 * out_dim))
    fc_weight = std_fc * jax.random.normal(k_fc, (out_dim, in_dim), dtype=jnp.float32)
    attn_weight = std_attn * jax.random.normal(k_attn, (1, 2 * out_dim), dtype=jnp.float32)

    # Input node features.
    h = jax.random.normal(k_h, (N, in_dim), dtype=jnp.float32)

    # Deterministic synthetic knowledge graph: 3 out-edges per node, both directions
    # (matches the kg.nodes / kg.edges(n) double loop in self_attention).
    adj_np = np.zeros((N, N), dtype=np.float32)
    for i in range(N):
        for d in (1, 5, 11):
            j = (i + d) % N
            adj_np[i, j] = 1.0
            adj_np[j, i] = 1.0
    adj = jnp.asarray(adj_np)

    out = jax.block_until_ready(gat_forward(h, fc_weight, attn_weight, adj))
    ref = gat_reference(h, fc_weight, attn_weight, adj)

    # bf16 is used only for the Wh-matmul operands and the p/Wh operands of the
    # aggregation matmul (f32 accumulation, exact-f32 softmax scores and normalization),
    # hence the slightly relaxed tolerance vs the f32 reference.
    np.testing.assert_allclose(np.asarray(out), np.asarray(ref), rtol=3e-2, atol=3e-2)

    print("KERNEL_OK")
</pallas_src>

<mosaic_0001>
module attributes {stable_mosaic.version = 11 : i64} {
  func.func @_proj_kernel(%arg0: i32, %arg1: memref<256x64xf32, #tpu.memory_space<vmem>>, %arg2: memref<64x128xbf16, #tpu.memory_space<vmem>>, %arg3: memref<64x128xf32, #tpu.memory_space<vmem>>, %arg4: memref<256x128xbf16, #tpu.memory_space<vmem>>, %arg5: memref<256x128xf32, #tpu.memory_space<vmem>>) attributes {dimension_semantics = [#tpu.dimension_semantics<parallel>], iteration_bounds = array<i64: 1>, scalar_prefetch = 0 : i64, scratch_operands = 0 : i64, tpu.core_type = #tpu.core_type<tc>, window_params = [{transform_indices = @transform_0, window_bounds = array<i64: 256, 64>}, {pipeline_mode = #tpu.pipeline_mode<synchronous>, transform_indices = @transform_1, window_bounds = array<i64: 64, 128>}, {pipeline_mode = #tpu.pipeline_mode<synchronous>, transform_indices = @transform_2, window_bounds = array<i64: 64, 128>}, {transform_indices = @transform_3, window_bounds = array<i64: 256, 128>}, {transform_indices = @transform_4, window_bounds = array<i64: 256, 128>}]} {
    %c0 = arith.constant 0 : index
    %c0_0 = arith.constant 0 : index
    %0 = vector.load %arg1[%c0, %c0_0] : memref<256x64xf32, #tpu.memory_space<vmem>>, vector<256x64xf32>
    %1 = arith.truncf %0 : vector<256x64xf32> to vector<256x64xbf16>
    %c0_1 = arith.constant 0 : index
    %c0_2 = arith.constant 0 : index
    %2 = vector.load %arg2[%c0_1, %c0_2] : memref<64x128xbf16, #tpu.memory_space<vmem>>, vector<64x128xbf16>
    %cst = arith.constant dense<0.000000e+00> : vector<256x128xf32>
    %3 = tpu.matmul %1, %2, %cst {dimension_numbers = #tpu.dot_dimension_numbers<[1], [0], [0], [1], [0, 0, 1, 1], [], []>} : vector<256x64xbf16>, vector<64x128xbf16>, vector<256x128xf32> -> vector<256x128xf32>
    %4 = arith.truncf %3 : vector<256x128xf32> to vector<256x128xbf16>
    %c0_3 = arith.constant 0 : index
    %c0_4 = arith.constant 0 : index
    %5 = vector.load %arg4[%c0_3, %c0_4] : memref<256x128xbf16, #tpu.memory_space<vmem>>, vector<256x128xbf16>
    tpu.vector_store %arg4[%c0_3, %c0_4], %4 {strides = array<i32>} : memref<256x128xbf16, #tpu.memory_space<vmem>>, vector<256x128xbf16>,
    %c0_5 = arith.constant 0 : index
    %c0_6 = arith.constant 0 : index
    %6 = vector.load %arg3[%c0_5, %c0_6] : memref<64x128xf32, #tpu.memory_space<vmem>>, vector<64x128xf32>
    %cst_7 = arith.constant dense<0.000000e+00> : vector<256x128xf32>
    %7 = tpu.matmul %0, %6, %cst_7 {dimension_numbers = #tpu.dot_dimension_numbers<[1], [0], [0], [1], [0, 0, 1, 1], [], []>} : vector<256x64xf32>, vector<64x128xf32>, vector<256x128xf32> -> vector<256x128xf32>
    %c0_8 = arith.constant 0 : index
    %c0_9 = arith.constant 0 : index
    %8 = vector.load %arg5[%c0_8, %c0_9] : memref<256x128xf32, #tpu.memory_space<vmem>>, vector<256x128xf32>
    tpu.vector_store %arg5[%c0_8, %c0_9], %7 {strides = array<i32>} : memref<256x128xf32, #tpu.memory_space<vmem>>, vector<256x128xf32>,
    return
  }
  func.func @transform_0(%arg0: i32) -> (i32, i32) {
    %c0_i32 = arith.constant 0 : i32
    %c0_i32_0 = arith.constant 0 : i32
    return %arg0, %c0_i32 : i32, i32
  }
  func.func @transform_1(%arg0: i32) -> (i32, i32) {
    %c0_i32 = arith.constant 0 : i32
    %c0_i32_0 = arith.constant 0 : i32
    %c0_i32_1 = arith.constant 0 : i32
    return %c0_i32, %c0_i32_0 : i32, i32
  }
  func.func @transform_2(%arg0: i32) -> (i32, i32) {
    %c0_i32 = arith.constant 0 : i32
    %c0_i32_0 = arith.constant 0 : i32
    %c0_i32_1 = arith.constant 0 : i32
    return %c0_i32, %c0_i32_0 : i32, i32
  }
  func.func @transform_3(%arg0: i32) -> (i32, i32) {
    %c0_i32 = arith.constant 0 : i32
    %c0_i32_0 = arith.constant 0 : i32
    return %arg0, %c0_i32 : i32, i32
  }
  func.func @transform_4(%arg0: i32) -> (i32, i32) {
    %c0_i32 = arith.constant 0 : i32
    %c0_i32_0 = arith.constant 0 : i32
    return %arg0, %c0_i32 : i32, i32
  }
}

</mosaic_0001>

<bundles_post_ra>
// kernel: tpu_custom_call.1
= control target key start
LH: loop header
LB: loop body
LE: loop exit
PB: predicated region body
PF: predicated region fallthrough
CT: control target
= control target key end

     0   :  { %10 = vsyncpa [#allocation3], 0  ;;  %s1036_s0 = inlined_call_operand.vmem [shape: f32[256,64], index: 0, kind: input, shape index: {}]   ;;  %s1037_s1 = inlined_call_operand.vmem [shape: bf16[64,128], index: 1, kind: input, shape index: {}]   ;;  %s1038_s2 = inlined_call_operand.vmem [shape: f32[64,128], index: 2, kind: input, shape index: {}]   ;;  %s1039_s3 = inlined_call_operand.hbm [shape: bf16[256,128], index: 3, kind: output, shape index: {0}]   ;;  %s1040_s4 = inlined_call_operand.hbm [shape: f32[256,128], index: 4, kind: output, shape index: {1}]  }
   0x1   :  { %v653_v0 = vld [vmem:[%s1037_s1 + $0x18] sm:$0xff]  ;;  %v307_v2 = vld [vmem:[%s1038_s2 + $0x30] sm:$0xff]  ;;  %v306_v4 = vld [vmem:[%s1038_s2 + $0x28] sm:$0xff] }
   0x2   :  { %v308_v1 = vld [vmem:[%s1038_s2 + $0x38] sm:$0xff]  ;;  %152 = vmatpush.bf16.msra.mxu0 %v653_v0  ;;  %749 = vmatpush.bf16.msra.mxu2 %v653_v0  ;;  %v652_v3 = vld [vmem:[%s1037_s1 + $0x10] sm:$0xff]  ;;  %v305_v5 = vld [vmem:[%s1038_s2 + $0x20] sm:$0xff] }
   0x3   :  { %753 = vmatpush.msra.mxu3 %v308_v1  ;;  %413 = vmatpush.msra.mxu1 %v308_v1  ;;  %v651_v6 = vld [vmem:[%s1037_s1 + $0x8] sm:$0xff]  ;;  %v304_v7 = vld [vmem:[%s1038_s2 + $0x18] sm:$0xff] }
   0x5   :  { %754 = vmatpush.msra.mxu3 %v307_v2  ;;  %414 = vmatpush.msra.mxu1 %v307_v2 }
   0x6   :  { %153 = vmatpush.bf16.msra.mxu0 %v652_v3  ;;  %750 = vmatpush.bf16.msra.mxu2 %v652_v3 }
   0x7   :  { %755 = vmatpush.msra.mxu3 %v306_v4  ;;  %415 = vmatpush.msra.mxu1 %v306_v4 }
   0x8   :  { %11 = vsyncpa [#allocation5], 0  ;;  %v303_v8 = vld [vmem:[%s1038_s2 + $0x10] sm:$0xff]  ;;  %v650_v9 = vld [vmem:[%s1037_s1] sm:$0xff]  ;;  %vm99_vm0 = vcmask 523264   ;;  %s569_s22 = sshll.u32 %s1040_s4, 4  ;;  %s570_s22 = int_to_ptr.hbm [resolvable:$true] %s569_s22 }
   0x9   :  { %756 = vmatpush.msra.mxu3 %v305_v5  ;;  %416 = vmatpush.msra.mxu1 %v305_v5  ;;  %v302_v10 = vld [vmem:[%s1038_s2 + $0x8] sm:$0xff]  ;;  %v19_v11 = vld [vmem:[%s1036_s0] sm:$0xff]  ;;  %v21_v18 = vld [vmem:[%s1036_s0 + $0x10] sm:$0xff]  ;;  %s820_s23 = smov [#allocation2]   ;;  %s556_s27 = sshll.u32 %s1039_s3, 4  ;;  %s557_s27 = int_to_ptr.hbm [resolvable:$true] %s556_s27 }
   0xa   :  { %154 = vmatpush.bf16.msra.mxu0 %v651_v6  ;;  %751 = vmatpush.bf16.msra.mxu2 %v651_v6  ;;  %v20_v12 = vld [vmem:[%s1036_s0 + $0x8] sm:$0xff]  ;;  %v35_v13 = vld [vmem:[%s1036_s0 + $0x80] sm:$0xff]  ;;  %v22_v19 = vld [vmem:[%s1036_s0 + $0x18] sm:$0xff]  ;;  %s554_s24 = sshll.u32 %s820_s23, 4  ;;  %s821_s28 = smov 128   ;;  %s555_s24 = int_to_ptr.vmem [resolvable:$true] %s554_s24 }
   0xb   :  { %757 = vmatpush.msra.mxu3 %v304_v7  ;;  %417 = vmatpush.msra.mxu1 %v304_v7  ;;  %v36_v14 = vld [vmem:[%s1036_s0 + $0x88] sm:$0xff]  ;;  %v301_v15 = vld [vmem:[%s1038_s2] sm:$0xff]  ;;  %v51_v16 = vpack.c.bf16 %v20_v12, %v19_v11  ;;  %v37_v20 = vld [vmem:[%s1036_s0 + $0x90] sm:$0xff]  ;;  %v52_v22 = vpack.c.bf16 %v22_v19, %v21_v18  ;;  %s822_s29 = smov 8   ;;  %s823_s4 = smov 64  }
   0xc   :  { %v59_v17 = vpack.c.bf16 %v36_v14, %v35_v13  ;;  %v38_v21 = vld [vmem:[%s1036_s0 + $0x98] sm:$0xff]  ;;  %v23_v24 = vld [vmem:[%s1036_s0 + $0x20] sm:$0xff]  ;;  %v24_v25 = vld [vmem:[%s1036_s0 + $0x28] sm:$0xff]  ;;  %s824_s30 = smov 4  }
   0xd   :  { %758 = vmatpush.msra.mxu3 %v303_v8  ;;  %418 = vmatpush.msra.mxu1 %v303_v8  ;;  %v60_v23 = vpack.c.bf16 %v38_v21, %v37_v20  ;;  %v39_v26 = vld [vmem:[%s1036_s0 + $0xa0] sm:$0xff]  ;;  %v40_v27 = vld [vmem:[%s1036_s0 + $0xa8] sm:$0xff]  ;;  %v53_v28 = vpack.c.bf16 %v24_v25, %v23_v24  ;;  %v25_v30 = vld [vmem:[%s1036_s0 + $0x30] sm:$0xff] }
   0xe   :  { %155 = vmatpush.bf16.msra.mxu0 %v650_v9  ;;  %752 = vmatpush.bf16.msra.mxu2 %v650_v9  ;;  %v61_v29 = vpack.c.bf16 %v40_v27, %v39_v26  ;;  %v26_v31 = vld [vmem:[%s1036_s0 + $0x38] sm:$0xff]  ;;  %v41_v32 = vld [vmem:[%s1036_s0 + $0xb0] sm:$0xff]  ;;  %v27_v36 = vld [vmem:[%s1036_s0 + $0x40] sm:$0xff] }
   0xf   :  { %759 = vmatpush.msra.mxu3 %v302_v10  ;;  %419 = vmatpush.msra.mxu1 %v302_v10  ;;  %v42_v33 = vld [vmem:[%s1036_s0 + $0xb8] sm:$0xff]  ;;  %v54_v34 = vpack.c.bf16 %v26_v31, %v25_v30  ;;  %v28_v37 = vld [vmem:[%s1036_s0 + $0x48] sm:$0xff]  ;;  %v43_v38 = vld [vmem:[%s1036_s0 + $0xc0] sm:$0xff] }
  0x10   :  { %v62_v35 = vpack.c.bf16 %v42_v33, %v41_v32  ;;  %v44_v39 = vld [vmem:[%s1036_s0 + $0xc8] sm:$0xff]  ;;  %v55_v40 = vpack.c.bf16 %v28_v37, %v27_v36  ;;  %v29_v42 = vld [vmem:[%s1036_s0 + $0x50] sm:$0xff]  ;;  %v30_v43 = vld [vmem:[%s1036_s0 + $0x58] sm:$0xff] }
  0x11   :  { %760 = vmatpush.msra.mxu3 %v301_v15  ;;  %420 = vmatpush.msra.mxu1 %v301_v15  ;;  %v63_v41 = vpack.c.bf16 %v44_v39, %v43_v38  ;;  %v45_v44 = vld [vmem:[%s1036_s0 + $0xd0] sm:$0xff]  ;;  %v46_v45 = vld [vmem:[%s1036_s0 + $0xd8] sm:$0xff]  ;;  %v56_v46 = vpack.c.bf16 %v30_v43, %v29_v42  ;;  %v31_v48 = vld [vmem:[%s1036_s0 + $0x60] sm:$0xff] }
  0x12   :  { %634 = vmatmul.msk.f32.vlgmr.msra.gmra.mxu3 %vm99_vm0, %v35_v13  ;;  %618 = vmatmul.msk.f32.vlgmr.msra.gmra.mxu1 %vm99_vm0, %v19_v11  ;;  %v64_v47 = vpack.c.bf16 %v46_v45, %v45_v44  ;;  %v32_v49 = vld [vmem:[%s1036_s0 + $0x68] sm:$0xff]  ;;  %v47_v50 = vld [vmem:[%s1036_s0 + $0xe0] sm:$0xff]  ;;  %v33_v54 = vld [vmem:[%s1036_s0 + $0x70] sm:$0xff] }
  0x13   :  { %602 = vmatmul.msk.bf16.vlgmr.msra.gmra.mxu0 %vm99_vm0, %v51_v16  ;;  %610 = vmatmul.msk.bf16.vlgmr.msra.gmra.mxu2 %vm99_vm0, %v59_v17  ;;  %v48_v51 = vld [vmem:[%s1036_s0 + $0xe8] sm:$0xff]  ;;  %v57_v52 = vpack.c.bf16 %v32_v49, %v31_v48  ;;  %v34_v55 = vld [vmem:[%s1036_s0 + $0x78] sm:$0xff]  ;;  %v49_v56 = vld [vmem:[%s1036_s0 + $0xf0] sm:$0xff] }
  0x14   :  { %v65_v53 = vpack.c.bf16 %v48_v51, %v47_v50  ;;  %v50_v57 = vld [vmem:[%s1036_s0 + $0xf8] sm:$0xff]  ;;  %v58_v58 = vpack.c.bf16 %v34_v55, %v33_v54  ;;  %s819_s0 = smov [#allocation4]  }
  0x15   :  { %v66_v59 = vpack.c.bf16 %v50_v57, %v49_v56  ;;  %s567_s2 = sshll.u32 %s819_s0, 4  ;;  %s568_s2 = int_to_ptr.vmem [resolvable:$true] %s567_s2 }
  0x1a   :  { %635 = vmatmul.msk.f32.gmra.mxu3 %vm99_vm0, %v36_v14  ;;  %619 = vmatmul.msk.f32.gmra.mxu1 %vm99_vm0, %v20_v12 }
  0x22   :  { %636 = vmatmul.msk.f32.gmra.mxu3 %vm99_vm0, %v37_v20  ;;  %620 = vmatmul.msk.f32.gmra.mxu1 %vm99_vm0, %v21_v18 }
  0x23   :  { %603 = vmatmul.msk.bf16.gmra.mxu0 %vm99_vm0, %v52_v22  ;;  %611 = vmatmul.msk.bf16.gmra.mxu2 %vm99_vm0, %v60_v23 }
  0x2a   :  { %637 = vmatmul.msk.f32.gmra.mxu3 %vm99_vm0, %v38_v21  ;;  %621 = vmatmul.msk.f32.gmra.mxu1 %vm99_vm0, %v22_v19 }
  0x32   :  { %638 = vmatmul.msk.f32.gmra.mxu3 %vm99_vm0, %v39_v26  ;;  %622 = vmatmul.msk.f32.gmra.mxu1 %vm99_vm0, %v23_v24 }
  0x33   :  { %604 = vmatmul.msk.bf16.gmra.mxu0 %vm99_vm0, %v53_v28  ;;  %612 = vmatmul.msk.bf16.gmra.mxu2 %vm99_vm0, %v61_v29 }
  0x3a   :  { %639 = vmatmul.msk.f32.gmra.mxu3 %vm99_vm0, %v40_v27  ;;  %623 = vmatmul.msk.f32.gmra.mxu1 %vm99_vm0, %v24_v25 }
  0x42   :  { %640 = vmatmul.msk.f32.gmra.mxu3 %vm99_vm0, %v41_v32  ;;  %624 = vmatmul.msk.f32.gmra.mxu1 %vm99_vm0, %v25_v30 }
  0x43   :  { %605 = vmatmul.msk.bf16.gmra.mxu0 %vm99_vm0, %v54_v34  ;;  %613 = vmatmul.msk.bf16.gmra.mxu2 %vm99_vm0, %v62_v35 }
  0x4a   :  { %641 = vmatmul.msk.f32.gmra.mxu3 %vm99_vm0, %v42_v33  ;;  %625 = vmatmul.msk.f32.gmra.mxu1 %vm99_vm0, %v26_v31 }
  0x52   :  { %642 = vmatmul.msk.f32.gmra.mxu3 %vm99_vm0, %v43_v38  ;;  %626 = vmatmul.msk.f32.gmra.mxu1 %vm99_vm0, %v27_v36 }
  0x53   :  { %606 = vmatmul.msk.bf16.gmra.mxu0 %vm99_vm0, %v55_v40  ;;  %614 = vmatmul.msk.bf16.gmra.mxu2 %vm99_vm0, %v63_v41 }
  0x5a   :  { %643 = vmatmul.msk.f32.gmra.mxu3 %vm99_vm0, %v44_v39  ;;  %627 = vmatmul.msk.f32.gmra.mxu1 %vm99_vm0, %v28_v37 }
  0x62   :  { %644 = vmatmul.msk.f32.gmra.mxu3 %vm99_vm0, %v45_v44  ;;  %628 = vmatmul.msk.f32.gmra.mxu1 %vm99_vm0, %v29_v42 }
  0x63   :  { %607 = vmatmul.msk.bf16.gmra.mxu0 %vm99_vm0, %v56_v46  ;;  %615 = vmatmul.msk.bf16.gmra.mxu2 %vm99_vm0, %v64_v47 }
  0x6a   :  { %645 = vmatmul.msk.f32.gmra.mxu3 %vm99_vm0, %v46_v45  ;;  %629 = vmatmul.msk.f32.gmra.mxu1 %vm99_vm0, %v30_v43 }
  0x72   :  { %646 = vmatmul.msk.f32.gmra.mxu3 %vm99_vm0, %v47_v50  ;;  %630 = vmatmul.msk.f32.gmra.mxu1 %vm99_vm0, %v31_v48 }
  0x73   :  { %608 = vmatmul.msk.bf16.gmra.mxu0 %vm99_vm0, %v57_v52  ;;  %616 = vmatmul.msk.bf16.gmra.mxu2 %vm99_vm0, %v65_v53 }
  0x7a   :  { %647 = vmatmul.msk.f32.gmra.mxu3 %vm99_vm0, %v48_v51  ;;  %631 = vmatmul.msk.f32.gmra.mxu1 %vm99_vm0, %v32_v49 }
  0x82   :  { %648 = vmatmul.msk.f32.gmra.mxu3 %vm99_vm0, %v49_v56  ;;  %632 = vmatmul.msk.f32.gmra.mxu1 %vm99_vm0, %v33_v54 }
  0x83   :  { %609 = vmatmul.msk.bf16.gmra.mxu0 %vm99_vm0, %v58_v58  ;;  %617 = vmatmul.msk.bf16.gmra.mxu2 %vm99_vm0, %v66_v59 }
  0x8a   :  { %649 = vmatmul.msk.f32.gmra.mxu3 %vm99_vm0, %v50_v57  ;;  %633 = vmatmul.msk.f32.gmra.mxu1 %vm99_vm0, %v34_v55 }
  0x8f   :  { %v422_v60 = vpop.f32.mrf.mxu1 }
  0x90   :  { %v157_v61 = vpop.f32.mrf.mxu0  ;;  %518 = vst [vmem:[#allocation4] sm:$0xff] %v422_v60 }
  0x95   :  { %v470_v62 = vpop.f32.mrf.mxu3 }
  0x96   :  { %v197_v63 = vpop.f32.mrf.mxu2  ;;  %534 = vst [vmem:[#allocation4 + $0x80] sm:$0xff] %v470_v62 }
  0x97   :  { %v425_v0 = vpop.f32.mrf.mxu1 }
  0x98   :  { %v159_v1 = vpop.f32.mrf.mxu0  ;;  %519 = vst [vmem:[#allocation4 + $0x8] sm:$0xff] %v425_v0 }
  0x99   :  { %v657_v2 = vpack.c.bf16 %v159_v1, %v157_v61 }
  0x9b   :  { %658 = vst [vmem:[#allocation2] sm:$0xff] %v657_v2  }
  0x9d   :  { %v473_v3 = vpop.f32.mrf.mxu3 }
  0x9e   :  { %v199_v4 = vpop.f32.mrf.mxu2  ;;  %535 = vst [vmem:[#allocation4 + $0x88] sm:$0xff] %v473_v3 }
  0x9f   :  { %v697_v5 = vpack.c.bf16 %v199_v4, %v197_v63  ;;  %v428_v6 = vpop.f32.mrf.mxu1 }
  0xa0   :  { %v162_v7 = vpop.f32.mrf.mxu0  ;;  %520 = vst [vmem:[#allocation4 + $0x10] sm:$0xff] %v428_v6 }
  0xa1   :  { %741 = vst [vmem:[#allocation2 + $0x40] sm:$0xff] %v697_v5  }
  0xa5   :  { %v476_v8 = vpop.f32.mrf.mxu3 }
  0xa6   :  { %v202_v9 = vpop.f32.mrf.mxu2  ;;  %536 = vst [vmem:[#allocation4 + $0x90] sm:$0xff] %v476_v8 }
  0xa7   :  { %v431_v10 = vpop.f32.mrf.mxu1 }
  0xa8   :  { %v164_v11 = vpop.f32.mrf.mxu0  ;;  %521 = vst [vmem:[#allocation4 + $0x18] sm:$0xff] %v431_v10 }
  0xa9   :  { %v662_v12 = vpack.c.bf16 %v164_v11, %v162_v7 }
  0xab   :  { %734 = vst [vmem:[#allocation2 + $0x8] sm:$0xff] %v662_v12  }
  0xad   :  { %v479_v13 = vpop.f32.mrf.mxu3 }
  0xae   :  { %v204_v14 = vpop.f32.mrf.mxu2  ;;  %537 = vst [vmem:[#allocation4 + $0x98] sm:$0xff] %v479_v13 }
  0xaf   :  { %v702_v15 = vpack.c.bf16 %v204_v14, %v202_v9  ;;  %v434_v16 = vpop.f32.mrf.mxu1 }
  0xb0   :  { %v167_v17 = vpop.f32.mrf.mxu0  ;;  %522 = vst [vmem:[#allocation4 + $0x20] sm:$0xff] %v434_v16 }
  0xb1   :  { %742 = vst [vmem:[#allocation2 + $0x48] sm:$0xff] %v702_v15  }
  0xb5   :  { %v482_v18 = vpop.f32.mrf.mxu3 }
  0xb6   :  { %v207_v19 = vpop.f32.mrf.mxu2  ;;  %538 = vst [vmem:[#allocation4 + $0xa0] sm:$0xff] %v482_v18 }
  0xb7   :  { %v437_v20 = vpop.f32.mrf.mxu1 }
  0xb8   :  { %v169_v21 = vpop.f32.mrf.mxu0  ;;  %523 = vst [vmem:[#allocation4 + $0x28] sm:$0xff] %v437_v20 }
  0xb9   :  { %v667_v22 = vpack.c.bf16 %v169_v21, %v167_v17 }
  0xbb   :  { %735 = vst [vmem:[#allocation2 + $0x10] sm:$0xff] %v667_v22  }
  0xbd   :  { %v485_v23 = vpop.f32.mrf.mxu3 }
  0xbe   :  { %v209_v24 = vpop.f32.mrf.mxu2  ;;  %539 = vst [vmem:[#allocation4 + $0xa8] sm:$0xff] %v485_v23 }
  0xbf   :  { %v707_v25 = vpack.c.bf16 %v209_v24, %v207_v19  ;;  %v440_v26 = vpop.f32.mrf.mxu1 }
  0xc0   :  { %v172_v27 = vpop.f32.mrf.mxu0  ;;  %524 = vst [vmem:[#allocation4 + $0x30] sm:$0xff] %v440_v26 }
  0xc1   :  { %743 = vst [vmem:[#allocation2 + $0x50] sm:$0xff] %v707_v25  }
  0xc5   :  { %v488_v28 = vpop.f32.mrf.mxu3 }
  0xc6   :  { %v212_v29 = vpop.f32.mrf.mxu2  ;;  %540 = vst [vmem:[#allocation4 + $0xb0] sm:$0xff] %v488_v28 }
  0xc7   :  { %v443_v30 = vpop.f32.mrf.mxu1 }
  0xc8   :  { %v174_v31 = vpop.f32.mrf.mxu0  ;;  %525 = vst [vmem:[#allocation4 + $0x38] sm:$0xff] %v443_v30 }
  0xc9   :  { %v672_v32 = vpack.c.bf16 %v174_v31, %v172_v27 }
  0xcb   :  { %736 = vst [vmem:[#allocation2 + $0x18] sm:$0xff] %v672_v32  }
  0xcd   :  { %v491_v33 = vpop.f32.mrf.mxu3 }
  0xce   :  { %v214_v34 = vpop.f32.mrf.mxu2  ;;  %541 = vst [vmem:[#allocation4 + $0xb8] sm:$0xff] %v491_v33 }
  0xcf   :  { %v712_v35 = vpack.c.bf16 %v214_v34, %v212_v29  ;;  %v446_v36 = vpop.f32.mrf.mxu1 }
  0xd0   :  { %v177_v37 = vpop.f32.mrf.mxu0  ;;  %526 = vst [vmem:[#allocation4 + $0x40] sm:$0xff] %v446_v36 }
  0xd1   :  { %744 = vst [vmem:[#allocation2 + $0x58] sm:$0xff] %v712_v35  }
  0xd5   :  { %v494_v38 = vpop.f32.mrf.mxu3 }
  0xd6   :  { %v217_v39 = vpop.f32.mrf.mxu2  ;;  %542 = vst [vmem:[#allocation4 + $0xc0] sm:$0xff] %v494_v38 }
  0xd7   :  { %v449_v40 = vpop.f32.mrf.mxu1 }
  0xd8   :  { %v179_v41 = vpop.f32.mrf.mxu0  ;;  %527 = vst [vmem:[#allocation4 + $0x48] sm:$0xff] %v449_v40 }
  0xd9   :  { %v677_v42 = vpack.c.bf16 %v179_v41, %v177_v37 }
  0xdb   :  { %737 = vst [vmem:[#allocation2 + $0x20] sm:$0xff] %v677_v42  }
  0xdd   :  { %v497_v43 = vpop.f32.mrf.mxu3 }
  0xde   :  { %v219_v44 = vpop.f32.mrf.mxu2  ;;  %543 = vst [vmem:[#allocation4 + $0xc8] sm:$0xff] %v497_v43 }
  0xdf   :  { %v717_v45 = vpack.c.bf16 %v219_v44, %v217_v39  ;;  %v452_v46 = vpop.f32.mrf.mxu1 }
  0xe0   :  { %v182_v47 = vpop.f32.mrf.mxu0  ;;  %528 = vst [vmem:[#allocation4 + $0x50] sm:$0xff] %v452_v46 }
  0xe1   :  { %745 = vst [vmem:[#allocation2 + $0x60] sm:$0xff] %v717_v45  }
  0xe5   :  { %v500_v48 = vpop.f32.mrf.mxu3 }
  0xe6   :  { %v222_v49 = vpop.f32.mrf.mxu2  ;;  %544 = vst [vmem:[#allocation4 + $0xd0] sm:$0xff] %v500_v48 }
  0xe7   :  { %v455_v50 = vpop.f32.mrf.mxu1 }
  0xe8   :  { %v184_v51 = vpop.f32.mrf.mxu0  ;;  %529 = vst [vmem:[#allocation4 + $0x58] sm:$0xff] %v455_v50 }
  0xe9   :  { %v682_v52 = vpack.c.bf16 %v184_v51, %v182_v47 }
  0xeb   :  { %738 = vst [vmem:[#allocation2 + $0x28] sm:$0xff] %v682_v52  }
  0xed   :  { %v503_v53 = vpop.f32.mrf.mxu3 }
  0xee   :  { %v224_v54 = vpop.f32.mrf.mxu2  ;;  %545 = vst [vmem:[#allocation4 + $0xd8] sm:$0xff] %v503_v53 }
  0xef   :  { %v722_v55 = vpack.c.bf16 %v224_v54, %v222_v49  ;;  %v458_v56 = vpop.f32.mrf.mxu1 }
  0xf0   :  { %v187_v57 = vpop.f32.mrf.mxu0  ;;  %530 = vst [vmem:[#allocation4 + $0x60] sm:$0xff] %v458_v56 }
  0xf1   :  { %746 = vst [vmem:[#allocation2 + $0x68] sm:$0xff] %v722_v55  }
  0xf5   :  { %v506_v58 = vpop.f32.mrf.mxu3 }
  0xf6   :  { %v227_v59 = vpop.f32.mrf.mxu2  ;;  %546 = vst [vmem:[#allocation4 + $0xe0] sm:$0xff] %v506_v58 }
  0xf7   :  { %v461_v60 = vpop.f32.mrf.mxu1 }
  0xf8   :  { %v189_v61 = vpop.f32.mrf.mxu0  ;;  %531 = vst [vmem:[#allocation4 + $0x68] sm:$0xff] %v461_v60 }
  0xf9   :  { %v687_v62 = vpack.c.bf16 %v189_v61, %v187_v57 }
  0xfb   :  { %739 = vst [vmem:[#allocation2 + $0x30] sm:$0xff] %v687_v62  }
  0xfd   :  { %v509_v63 = vpop.f32.mrf.mxu3 }
  0xfe   :  { %v229_v0 = vpop.f32.mrf.mxu2  ;;  %547 = vst [vmem:[#allocation4 + $0xe8] sm:$0xff] %v509_v63 }
  0xff   :  { %v727_v1 = vpack.c.bf16 %v229_v0, %v227_v59  ;;  %v464_v2 = vpop.f32.mrf.mxu1 }
 0x100   :  { %v192_v3 = vpop.f32.mrf.mxu0  ;;  %532 = vst [vmem:[#allocation4 + $0x70] sm:$0xff] %v464_v2 }
 0x101   :  { %747 = vst [vmem:[#allocation2 + $0x70] sm:$0xff] %v727_v1  }
 0x105   :  { %v512_v4 = vpop.f32.mrf.mxu3 }
 0x106   :  { %v232_v5 = vpop.f32.mrf.mxu2  ;;  %548 = vst [vmem:[#allocation4 + $0xf0] sm:$0xff] %v512_v4 }
 0x107   :  { %v467_v6 = vpop.f32.mrf.mxu1 }
 0x108   :  { %v194_v7 = vpop.f32.mrf.mxu0  ;;  %533 = vst [vmem:[#allocation4 + $0x78] sm:$0xff] %v467_v6 }
 0x109   :  { %v692_v8 = vpack.c.bf16 %v194_v7, %v192_v3 }
 0x10b   :  { %740 = vst [vmem:[#allocation2 + $0x38] sm:$0xff] %v692_v8  }
 0x10d   :  { %v515_v9 = vpop.f32.mrf.mxu3 }
 0x10e   :  { %v234_v10 = vpop.f32.mrf.mxu2  ;;  %549 = vst [vmem:[#allocation4 + $0xf8] sm:$0xff] %v515_v9 }
 0x10f   :  { %v732_v11 = vpack.c.bf16 %v234_v10, %v232_v5  ;;  %575 = dma.vmem_to_hbm [thread:$0]  %s568_s2, 4096, %s570_s22, [#allocation5], %s821_s28, %s821_s28, %s822_s29  }
 0x111   :  { %748 = vst [vmem:[#allocation2 + $0x78] sm:$0xff] %v732_v11  }
 0x112   :  { %562 = dma.vmem_to_hbm [thread:$0]  %s555_s24, 2048, %s557_s27, [#allocation3], %s823_s4, %s823_s4, %s824_s30  }
 0x113   :  { %815 = dma.done.wait [#allocation3], 2048  }
 0x114   :  { %816 = vsyncadd [#allocation3], 4294965248 }
 0x115   :  { %817 = dma.done.wait [#allocation5], 4096  }
 0x116   :  { %818 = vsyncadd [#allocation5], 4294963200 }
 0x117   :  { %584 = vsyncpa [#allocation3], 1 }
 0x118   :  { %585 = vsyncpa [#allocation5], 1 }

</bundles_post_ra>
